<compile_context>
chip_gen: v7x
topology: tpu7x:2x2x1
jax: 0.10.0
libtpu: 0.0.40
codegen_flags: <defaults>
</compile_context>

<pallas_src>
import jax
import jax.numpy as jnp
from jax.experimental import pallas as pl
from jax.experimental.pallas import tpu as pltpu

NUM_CLASSES = 2
HIDDEN = 64
CIN = 3

_VMEM_LIMIT_BYTES = 32 * 1024 * 1024  # safe on v5e/v6e/v7x; tiles sized well below


def _default_blocks(B, N):
    """Pick (block_b, block_n): >=~512 rows per grid step, sublane aligned."""
    if N <= 1024:
        block_n = N if N < 8 else (N // 8) * 8
    else:
        block_n = 1024
    want_rows = 512
    bb = max(1, -(-want_rows // block_n))
    if B <= 8 or bb >= B:
        block_b = B
    else:
        block_b = min(B, ((bb + 7) // 8) * 8)  # keep output sublane dim mult of 8
    return block_b, block_n


def _max_pool_features(x, w1, b1, *, block_b=None, block_n=None):
    """Returns pooled features m = max_N(x @ W1) + b1, shape (B, HIDDEN)."""
    B, N, cin = x.shape
    assert cin == CIN
    db, dn = _default_blocks(B, N)
    block_b = db if block_b is None else min(block_b, B)
    block_n = dn if block_n is None else min(block_n, N)

    def kernel(x_ref, w1_ref, b1_ref, o_ref):
        ni = pl.program_id(1)

        @pl.when(ni == 0)
        def _init():
            o_ref[...] = jnp.full(o_ref.shape, -jnp.inf, dtype=o_ref.dtype)

        xb = x_ref[...]                       # (TB, TN, CIN)
        tb, tn, c = xb.shape
        # One big MXU matmul over TB*TN rows.
        h = jnp.dot(xb.reshape(tb * tn, c), w1_ref[...],
                    preferred_element_type=jnp.float32)      # (TB*TN, H)
        h = h.reshape(tb, tn, HIDDEN)
        if N % block_n != 0:
            # Mask rows of the (partial) last point tile so padding never wins
            # the max.
            row = ni * block_n + jax.lax.broadcasted_iota(
                jnp.int32, (1, tn, 1), 1)
            h = jnp.where(row < N, h, -jnp.inf)
        o_ref[...] = jnp.maximum(o_ref[...], jnp.max(h, axis=1))

        @pl.when(ni == pl.num_programs(1) - 1)
        def _finalize():
            # bias is constant over points -> add once after the max
            o_ref[...] = o_ref[...] + b1_ref[...]

    grid = (pl.cdiv(B, block_b), pl.cdiv(N, block_n))
    return pl.pallas_call(
        kernel,
        out_shape=jax.ShapeDtypeStruct((B, HIDDEN), jnp.float32),
        grid_spec=pltpu.PrefetchScalarGridSpec(
            num_scalar_prefetch=0,
            grid=grid,
            in_specs=[
                pl.BlockSpec((block_b, block_n, CIN), lambda bi, ni: (bi, ni, 0)),
                pl.BlockSpec((CIN, HIDDEN), lambda bi, ni: (0, 0)),
                pl.BlockSpec((1, HIDDEN), lambda bi, ni: (0, 0)),
            ],
            out_specs=pl.BlockSpec((block_b, HIDDEN), lambda bi, ni: (bi, 0)),
        ),
        compiler_params=pltpu.CompilerParams(
            dimension_semantics=("parallel", "arbitrary"),
            vmem_limit_bytes=_VMEM_LIMIT_BYTES,
        ),
    )(x, w1, b1)


def _classifier_head(pooled, w2, b2):
    """softmax(pooled @ W2 + b2) for all B rows in a single grid step."""
    B = pooled.shape[0]

    def kernel(m_ref, w2_ref, b2_ref, o_ref):
        logits = jnp.dot(m_ref[...], w2_ref[...],
                         preferred_element_type=jnp.float32) + b2_ref[...]
        z = logits - jnp.max(logits, axis=-1, keepdims=True)
        e = jnp.exp(z)
        o_ref[...] = e / jnp.sum(e, axis=-1, keepdims=True)

    return pl.pallas_call(
        kernel,
        out_shape=jax.ShapeDtypeStruct((B, NUM_CLASSES), jnp.float32),
        grid_spec=pltpu.PrefetchScalarGridSpec(
            num_scalar_prefetch=0,
            grid=(1,),
            in_specs=[
                pl.BlockSpec((B, HIDDEN), lambda i: (0, 0)),
                pl.BlockSpec((HIDDEN, NUM_CLASSES), lambda i: (0, 0)),
                pl.BlockSpec((1, NUM_CLASSES), lambda i: (0, 0)),
            ],
            out_specs=pl.BlockSpec((B, NUM_CLASSES), lambda i: (0, 0)),
        ),
    )(pooled, w2, b2)


def simple_nn_forward(x, w1, b1, w2, b2, *, block_b=None, block_n=None):
    """x: (B, N, 3) float32; returns softmax probabilities (B, NUM_CLASSES)."""
    pooled = _max_pool_features(x, w1, b1, block_b=block_b, block_n=block_n)
    return _classifier_head(pooled, w2, b2)


def init_params(key):
    """Deterministic param init with PyTorch-style uniform fan-in bounds."""
    k1, k2, k3, k4 = jax.random.split(key, 4)
    bound1 = 1.0 / (CIN ** 0.5)        # Conv1d(3,64,1) fan_in = 3*1
    bound2 = 1.0 / (HIDDEN ** 0.5)     # Linear(64, nc) fan_in = 64
    w1 = jax.random.uniform(k1, (CIN, HIDDEN), jnp.float32, -bound1, bound1)
    b1 = jax.random.uniform(k2, (1, HIDDEN), jnp.float32, -bound1, bound1)
    w2 = jax.random.uniform(k3, (HIDDEN, NUM_CLASSES), jnp.float32, -bound2, bound2)
    b2 = jax.random.uniform(k4, (1, NUM_CLASSES), jnp.float32, -bound2, bound2)
    return w1, b1, w2, b2


def reference_forward(x, w1, b1, w2, b2):
    hi = jax.lax.Precision.HIGHEST
    h = jnp.einsum("bnc,ch->bnh", x, w1, precision=hi) + b1[0]
    m = jnp.max(h, axis=1)
    logits = jnp.dot(m, w2, precision=hi) + b2[0]
    return jax.nn.softmax(logits, axis=-1)


if __name__ == "__main__":
    key = jax.random.PRNGKey(0)
    kx, kp = jax.random.split(key)

    B, N = 4, 64
    x = jax.random.normal(kx, (B, N, CIN), dtype=jnp.float32)
    w1, b1, w2, b2 = init_params(kp)
    ref = reference_forward(x, w1, b1, w2, b2)

    # Multi-tile path: grid (1, 2) -> exercises the running-max accumulator.
    out = jax.block_until_ready(
        simple_nn_forward(x, w1, b1, w2, b2, block_b=4, block_n=32))
    assert out.shape == (B, NUM_CLASSES)
    assert jnp.allclose(out, ref, atol=1e-5, rtol=1e-5), (out, ref)

    # Default tiling (single grid step).
    out2 = jax.block_until_ready(simple_nn_forward(x, w1, b1, w2, b2))
    assert jnp.allclose(out2, ref, atol=1e-5, rtol=1e-5), (out2, ref)

    # Ragged point count: exercises -inf masking of the partial last point tile.
    x3 = jax.random.normal(jax.random.PRNGKey(1), (B, 40, CIN), dtype=jnp.float32)
    ref3 = reference_forward(x3, w1, b1, w2, b2)
    out3 = jax.block_until_ready(
        simple_nn_forward(x3, w1, b1, w2, b2, block_b=4, block_n=32))
    assert jnp.allclose(out3, ref3, atol=1e-5, rtol=1e-5), (out3, ref3)

    print("KERNEL_OK")
</pallas_src>

<mosaic_0001>
module attributes {stable_mosaic.version = 11 : i64} {
  func.func @kernel(%arg0: i32, %arg1: i32, %arg2: memref<4x32x3xf32, #tpu.memory_space<vmem>>, %arg3: memref<3x64xf32, #tpu.memory_space<vmem>>, %arg4: memref<1x64xf32, #tpu.memory_space<vmem>>, %arg5: memref<4x64xf32, #tpu.memory_space<vmem>>) attributes {dimension_semantics = [#tpu.dimension_semantics<parallel>, #tpu.dimension_semantics<arbitrary>], iteration_bounds = array<i64: 1, 2>, scalar_prefetch = 0 : i64, scratch_operands = 0 : i64, tpu.core_type = #tpu.core_type<tc>, window_params = [{transform_indices = @transform_0, window_bounds = array<i64: 4, 32, 3>}, {pipeline_mode = #tpu.pipeline_mode<synchronous>, transform_indices = @transform_1, window_bounds = array<i64: 3, 64>}, {pipeline_mode = #tpu.pipeline_mode<synchronous>, transform_indices = @transform_2, window_bounds = array<i64: 1, 64>}, {transform_indices = @transform_3, window_bounds = array<i64: 4, 64>}]} {
    %c0_i32 = arith.constant 0 : i32
    %0 = arith.cmpi eq, %arg1, %c0_i32 : i32
    %1 = arith.extui %0 : i1 to i32
    %c0_i32_0 = arith.constant 0 : i32
    %2 = arith.cmpi ne, %1, %c0_i32_0 : i32
    scf.if %2 {
      %cst_11 = arith.constant 0xFF800000 : f32
      %15 = vector.broadcast %cst_11 : f32 to vector<4x64xf32>
      %c0_12 = arith.constant 0 : index
      %c0_13 = arith.constant 0 : index
      %16 = vector.load %arg5[%c0_12, %c0_13] : memref<4x64xf32, #tpu.memory_space<vmem>>, vector<4x64xf32>
      tpu.vector_store %arg5[%c0_12, %c0_13], %15 {strides = array<i32>} : memref<4x64xf32, #tpu.memory_space<vmem>>, vector<4x64xf32>,
    } else {
    }
    %c0 = arith.constant 0 : index
    %c0_1 = arith.constant 0 : index
    %c0_2 = arith.constant 0 : index
    %3 = vector.load %arg2[%c0, %c0_1, %c0_2] : memref<4x32x3xf32, #tpu.memory_space<vmem>>, vector<4x32x3xf32>
    %4 = vector.shape_cast %3 : vector<4x32x3xf32> to vector<128x3xf32>
    %c0_3 = arith.constant 0 : index
    %c0_4 = arith.constant 0 : index
    %5 = vector.load %arg3[%c0_3, %c0_4] : memref<3x64xf32, #tpu.memory_space<vmem>>, vector<3x64xf32>
    %cst = arith.constant dense<0.000000e+00> : vector<128x64xf32>
    %6 = tpu.matmul %4, %5, %cst {dimension_numbers = #tpu.dot_dimension_numbers<[1], [0], [0], [1], [0, 0, 1, 1], [], []>} : vector<128x3xf32>, vector<3x64xf32>, vector<128x64xf32> -> vector<128x64xf32>
    %7 = vector.shape_cast %6 : vector<128x64xf32> to vector<4x32x64xf32>
    %c0_5 = arith.constant 0 : index
    %c0_6 = arith.constant 0 : index
    %8 = vector.load %arg5[%c0_5, %c0_6] : memref<4x64xf32, #tpu.memory_space<vmem>>, vector<4x64xf32>
    %cst_7 = arith.constant dense<0xFF800000> : vector<4x64xf32>
    %9 = vector.multi_reduction <maximumf>, %7, %cst_7 [1] : vector<4x32x64xf32> to vector<4x64xf32>
    %10 = arith.maximumf %8, %9 : vector<4x64xf32>
    %c0_8 = arith.constant 0 : index
    %c0_9 = arith.constant 0 : index
    %11 = vector.load %arg5[%c0_8, %c0_9] : memref<4x64xf32, #tpu.memory_space<vmem>>, vector<4x64xf32>
    tpu.vector_store %arg5[%c0_8, %c0_9], %10 {strides = array<i32>} : memref<4x64xf32, #tpu.memory_space<vmem>>, vector<4x64xf32>,
    %c1_i32 = arith.constant 1 : i32
    %12 = arith.cmpi eq, %arg1, %c1_i32 : i32
    %13 = arith.extui %12 : i1 to i32
    %c0_i32_10 = arith.constant 0 : i32
    %14 = arith.cmpi ne, %13, %c0_i32_10 : i32
    scf.if %14 {
      %c0_11 = arith.constant 0 : index
      %c0_12 = arith.constant 0 : index
      %15 = vector.load %arg5[%c0_11, %c0_12] : memref<4x64xf32, #tpu.memory_space<vmem>>, vector<4x64xf32>
      %c0_13 = arith.constant 0 : index
      %c0_14 = arith.constant 0 : index
      %16 = vector.load %arg4[%c0_13, %c0_14] : memref<1x64xf32, #tpu.memory_space<vmem>>, vector<1x64xf32>
      %17 = vector.broadcast %16 : vector<1x64xf32> to vector<4x64xf32>
      %18 = arith.addf %15, %17 : vector<4x64xf32>
      %c0_15 = arith.constant 0 : index
      %c0_16 = arith.constant 0 : index
      %19 = vector.load %arg5[%c0_15, %c0_16] : memref<4x64xf32, #tpu.memory_space<vmem>>, vector<4x64xf32>
      tpu.vector_store %arg5[%c0_15, %c0_16], %18 {strides = array<i32>} : memref<4x64xf32, #tpu.memory_space<vmem>>, vector<4x64xf32>,
    } else {
    }
    return
  }
  func.func @transform_0(%arg0: i32, %arg1: i32) -> (i32, i32, i32) {
    %c0_i32 = arith.constant 0 : i32
    %c0_i32_0 = arith.constant 0 : i32
    return %arg0, %arg1, %c0_i32 : i32, i32, i32
  }
  func.func @transform_1(%arg0: i32, %arg1: i32) -> (i32, i32) {
    %c0_i32 = arith.constant 0 : i32
    %c0_i32_0 = arith.constant 0 : i32
    %c0_i32_1 = arith.constant 0 : i32
    return %c0_i32, %c0_i32_0 : i32, i32
  }
  func.func @transform_2(%arg0: i32, %arg1: i32) -> (i32, i32) {
    %c0_i32 = arith.constant 0 : i32
    %c0_i32_0 = arith.constant 0 : i32
    %c0_i32_1 = arith.constant 0 : i32
    return %c0_i32, %c0_i32_0 : i32, i32
  }
  func.func @transform_3(%arg0: i32, %arg1: i32) -> (i32, i32) {
    %c0_i32 = arith.constant 0 : i32
    %c0_i32_0 = arith.constant 0 : i32
    return %arg0, %c0_i32 : i32, i32
  }
}

</mosaic_0001>

<bundles_post_ra>
// kernel: tpu_custom_call.1
= control target key start
LH: loop header
LB: loop body
LE: loop exit
PB: predicated region body
PF: predicated region fallthrough
CT: control target
= control target key end

     0   :  { %8 = vsyncpa [#allocation4], 0  ;;  %s865_s12 = smov 0   ;;  %s867_s13 = smov 0   ;;  %s1031_s0 = inlined_call_operand.vmem [shape: f32[4,64,3], index: 0, kind: input, shape index: {}]   ;;  %s1032_s1 = inlined_call_operand.vmem [shape: f32[3,64], index: 1, kind: input, shape index: {}]   ;;  %s1033_s2 = inlined_call_operand.vmem [shape: f32[1,64], index: 2, kind: input, shape index: {}]   ;;  %s1034_s3 = inlined_call_operand.hbm [shape: f32[4,64], index: 3, kind: output, shape index: {}]  }
   0x1   :  { %s869_s14 = smov 0   ;;  %s871_s15 = smov 0  }
   0x2   :  { %s873_s16 = smov 0  }
   0x3 LB: > { %s647_s17 = sadd.s32 4294967295, %s841_s16   ;;  %s23_s18 = sadd.s32 1, %s837_s15  ;;  %s841_s16 = sphi %s873_s16, %s14_s16   ;;  %s837_s15 = sphi %s871_s15, %s1039_s15   ;;  %s833_s14 = sphi %s869_s14, %s1038_s14   ;;  %s829_s13 = sphi %s867_s13, %s1037_s13   ;;  %s825_s12 = sphi %s865_s12, %s1036_s12  }
   0x4   : > { %p24_p0 = scmp.ge.s32.totalorder %s23_s18, 2  ;;  %p42_p1 = scmp.ne.s32.totalorder %s829_s13, %s825_s12 }
   0x5   : > { %p43_p2 = scmp.eq.s32.totalorder %s841_s16, 0  ;;  %s35_s20 = sadd.s32 1, %s829_s13 }
   0x6   : > { %s1041_s18 = smov (%p24_p0, %s23_s18), 0  ;;  %p649_p5 = scmp.ge.s32.totalorder %s841_s16, 2 }
   0x7   : > { %p44_p3 = por %p43_p2, %p42_p1  ;;  %s31_s19 = ssub.s32 %s837_s15, %s1041_s18 }
   0x8   : > { %p33_p4 = scmp.eq.s32.totalorder %s31_s19, 0  ;;  %142 = sbr.rel (%p649_p5) target bundleno = 27 (0x1b), region = 24 }
   0xa   : > { %s901_s21 = scalar_select %p33_p4, %s829_s13, %s35_s20  }
   0xf   : > { %145 = sbr.rel (!%p44_p3) target bundleno = 27 (0x1b), region = 28  ;;  %s147_s22 = sand.u32 (%p44_p3), 1, %s829_s13  }
  0x10   : > { %s679_s23 = sshll.u32 (%p44_p3), %s837_s15, 5  ;;  %s650_s24 = sshll.u32 (%p44_p3), %s147_s22, 7 }
  0x11   : > { %s909_s27 = scalar_lea.vmem (%p44_p3), %s1031_s0, %s679_s23  ;;  %s149_s28 = scalar_lea.vmem (%p44_p3), [#allocation2], %s650_s24 }
  0x12   : > { %v213_v0 = vld [vmem:[%s909_s27] sm:$0xff] (%p44_p3)  ;;  %v215_v1 = vld [vmem:[%s909_s27 + $0x8] sm:$0xff] (%p44_p3)  ;;  %v217_v2 = vld [vmem:[%s909_s27 + $0x10] sm:$0xff] (%p44_p3) }
  0x13   : > { %214 = vst [vmem:[%s149_s28] sm:$0xff] (%p44_p3), %v213_v0  ;;  %216 = vst [vmem:[%s149_s28 + $0x8] sm:$0xff] (%p44_p3), %v215_v1  ;;  %v219_v3 = vld [vmem:[%s909_s27 + $0x18] sm:$0xff] (%p44_p3)  ;;  %v221_v4 = vld [vmem:[%s909_s27 + $0x40] sm:$0xff] (%p44_p3) }
  0x14   : > { %218 = vst [vmem:[%s149_s28 + $0x10] sm:$0xff] (%p44_p3), %v217_v2  ;;  %v223_v5 = vld [vmem:[%s909_s27 + $0x48] sm:$0xff] (%p44_p3)  ;;  %220 = vst [vmem:[%s149_s28 + $0x18] sm:$0xff] (%p44_p3), %v219_v3  ;;  %v225_v6 = vld [vmem:[%s909_s27 + $0x50] sm:$0xff] (%p44_p3) }
  0x15   : > { %222 = vst [vmem:[%s149_s28 + $0x20] sm:$0xff] (%p44_p3), %v221_v4  ;;  %224 = vst [vmem:[%s149_s28 + $0x28] sm:$0xff] (%p44_p3), %v223_v5  ;;  %v227_v7 = vld [vmem:[%s909_s27 + $0x58] sm:$0xff] (%p44_p3)  ;;  %v229_v8 = vld [vmem:[%s909_s27 + $0x80] sm:$0xff] (%p44_p3) }
  0x16   : > { %226 = vst [vmem:[%s149_s28 + $0x30] sm:$0xff] %v225_v6  ;;  %228 = vst [vmem:[%s149_s28 + $0x38] sm:$0xff] %v227_v7  ;;  %v231_v9 = vld [vmem:[%s909_s27 + $0x88] sm:$0xff]  ;;  %v233_v10 = vld [vmem:[%s909_s27 + $0x90] sm:$0xff] }
  0x17   : > { %230 = vst [vmem:[%s149_s28 + $0x40] sm:$0xff] %v229_v8  ;;  %v235_v11 = vld [vmem:[%s909_s27 + $0x98] sm:$0xff]  ;;  %232 = vst [vmem:[%s149_s28 + $0x48] sm:$0xff] %v231_v9  ;;  %v237_v12 = vld [vmem:[%s909_s27 + $0xc0] sm:$0xff] }
  0x18   : > { %234 = vst [vmem:[%s149_s28 + $0x50] sm:$0xff] %v233_v10  ;;  %236 = vst [vmem:[%s149_s28 + $0x58] sm:$0xff] %v235_v11  ;;  %v239_v13 = vld [vmem:[%s909_s27 + $0xc8] sm:$0xff]  ;;  %v241_v14 = vld [vmem:[%s909_s27 + $0xd0] sm:$0xff] }
  0x19   : > { %238 = vst [vmem:[%s149_s28 + $0x60] sm:$0xff] %v237_v12  ;;  %240 = vst [vmem:[%s149_s28 + $0x68] sm:$0xff] %v239_v13  ;;  %v243_v15 = vld [vmem:[%s909_s27 + $0xd8] sm:$0xff] }
  0x1a   : > { %242 = vst [vmem:[%s149_s28 + $0x70] sm:$0xff] %v241_v14  ;;  %244 = vst [vmem:[%s149_s28 + $0x78] sm:$0xff] %v243_v15 }
  0x1b PF: > { %p653_p6 = scmp.ge.s32.totalorder %s841_s16, 1  ;;  %p249_p7 = scmp.lt.s32.totalorder %s841_s16, 3 }
  0x1d   : > { %p250_p8 = pnand %p653_p6, %p249_p7 }
  0x1e   : > { %s256_s29 = sand.u32 (!%p250_p8), 1, %s825_s12   ;;  %p655_p9 = scmp.ne.s32.totalorder (!%p250_p8), %s833_s14, 0 }
  0x1f   : > { %253 = sbr.rel (%p250_p8) target bundleno = 332 (0x14c), region = 66  ;;  %s654_s30 = sshll.u32 (!%p250_p8), %s256_s29, 7 }
  0x20   : > { %s930_s4 = scalar_lea.vmem (!%p250_p8), [#allocation2], %s654_s30 }
  0x26   : > { %279 = sbr.rel (%p655_p9) target bundleno = 45 (0x2d), region = 74  ;;  %vm280_vm0 = vcmask (!%p655_p9), 519168   ;;  %v843_v16 = vmov (!%p655_p9), -inf  }
  0x27   : > { %281 = vst.msk [vmem:[#allocation3] sm:$0xf] (!%p655_p9), %vm280_vm0, %v843_v16 }
  0x2d PF: > { %v298_v17 = vld [vmem:[%s1032_s1] sm:$0x7]  ;;  %vm348_vm1 = vcmask 1042432   ;;  %vm299_vm2 = vcmask 23552   ;;  %v283_v20 = vld [vmem:[%s930_s4 + $0x8] sm:$0xff]  ;;  %v284_v22 = vld [vmem:[%s930_s4 + $0x10] sm:$0xff] }
  0x2e   : > { %v282_v18 = vld [vmem:[%s930_s4] sm:$0xff]  ;;  %697 = vmatprep.subr.msk.mxu0 %vm348_vm1, %v298_v17  ;;  %723 = vmatprep.subr.msk.mxu1 %vm348_vm1, %v298_v17  ;;  %v291_v21 = vld [vmem:[%s930_s4 + $0x48] sm:$0xff]  ;;  %v292_v23 = vld [vmem:[%s930_s4 + $0x50] sm:$0xff]  ;;  %vm498_vm3 = vcmask 523264   ;;  %vm555_vm4 = vcmask 1041409   ;;  %vm557_vm5 = vcmask 1042434  }
  0x2f   : > { %v290_v19 = vld [vmem:[%s930_s4 + $0x40] sm:$0xff]  ;;  %698 = vmatpush3.msk.msra.mxu0 %vm348_vm1, %v298_v17  ;;  %724 = vmatpush3.msk.msra.mxu1 %vm348_vm1, %v298_v17  ;;  %v285_v24 = vld [vmem:[%s930_s4 + $0x18] sm:$0xff]  ;;  %v287_v28 = vld [vmem:[%s930_s4 + $0x28] sm:$0xff]  ;;  %vm559_vm6 = vcmask 1043459   ;;  %vm563_vm7 = vcmask 519168   ;;  %p673_p10 = scmp.ne.s32.totalorder %s833_s14, 1 }
  0x30   : > { %699 = vmatprep.mubr.msk.f32.mxu0 %vm299_vm2, %v282_v18  ;;  %711 = vmatprep.mubr.msk.f32.mxu1 %vm299_vm2, %v290_v19  ;;  %v293_v25 = vld [vmem:[%s930_s4 + $0x58] sm:$0xff]  ;;  %v286_v26 = vld [vmem:[%s930_s4 + $0x20] sm:$0xff]  ;;  %v295_v29 = vld [vmem:[%s930_s4 + $0x68] sm:$0xff] }
  0x31   : > { %700 = vmatmul.mubr.msk.f32.vlgmr.msra.gmra.mrb[0].mxu0 %vm299_vm2, %v283_v20  ;;  %712 = vmatmul.mubr.msk.f32.vlgmr.msra.gmra.mrb[0].mxu1 %vm299_vm2, %v291_v21  ;;  %v294_v27 = vld [vmem:[%s930_s4 + $0x60] sm:$0xff]  ;;  %v288_v30 = vld [vmem:[%s930_s4 + $0x30] sm:$0xff]  ;;  %v289_v32 = vld [vmem:[%s930_s4 + $0x38] sm:$0xff] }
  0x32   : > { %702 = vmatprep.mubr.msk.f32.mxu0 %vm299_vm2, %v284_v22  ;;  %714 = vmatprep.mubr.msk.f32.mxu1 %vm299_vm2, %v292_v23  ;;  %v296_v31 = vld [vmem:[%s930_s4 + $0x70] sm:$0xff]  ;;  %v297_v33 = vld [vmem:[%s930_s4 + $0x78] sm:$0xff] }
  0x35   : > { %703 = vmatmul.mubr.msk.f32.gmra.mrb[2].mxu0 %vm299_vm2, %v285_v24  ;;  %715 = vmatmul.mubr.msk.f32.gmra.mrb[2].mxu1 %vm299_vm2, %v293_v25 }
  0x36   : > { %705 = vmatprep.mubr.msk.f32.mxu0 %vm299_vm2, %v286_v26  ;;  %717 = vmatprep.mubr.msk.f32.mxu1 %vm299_vm2, %v294_v27 }
  0x39   : > { %706 = vmatmul.mubr.msk.f32.gmra.mrb[4].mxu0 %vm299_vm2, %v287_v28  ;;  %718 = vmatmul.mubr.msk.f32.gmra.mrb[4].mxu1 %vm299_vm2, %v295_v29 }
  0x3a   : > { %708 = vmatprep.mubr.msk.f32.mxu0 %vm299_vm2, %v288_v30  ;;  %720 = vmatprep.mubr.msk.f32.mxu1 %vm299_vm2, %v296_v31 }
  0x3d   : > { %709 = vmatmul.mubr.msk.f32.gmra.mrb[6].mxu0 %vm299_vm2, %v289_v32  ;;  %721 = vmatmul.mubr.msk.f32.gmra.mrb[6].mxu1 %vm299_vm2, %v297_v33 }
 0x104   : > { %v701_v34 = vpop.f32.mrb[0].mxu0  ;;  %v713_v35 = vpop.f32.mrb[0].mxu1 }
 0x105   : > { %v500_v36 = vsel %vm498_vm3, %v701_v34, -inf  ;;  %v418_v37 = vpop.f32.mrb[1].mxu0  ;;  %v526_v38 = vsel %vm498_vm3, %v713_v35, -inf  ;;  %v458_v39 = vpop.f32.mrb[1].mxu1 }
 0x106   : > { %v499_v40 = vsel %vm498_vm3, %v418_v37, -inf  ;;  %v525_v41 = vsel %vm498_vm3, %v458_v39, -inf }
 0x107   : > { %v501_v42 = vmax.f32 %v499_v40, %v500_v36  ;;  %v527_v43 = vmax.f32 %v525_v41, %v526_v38  ;;  %v497_v38 = vld [vmem:[#allocation3] sm:$0xf] }
 0x108   : > { %v704_v44 = vpop.f32.mrb[2].mxu0  ;;  %v716_v45 = vpop.f32.mrb[2].mxu1 }
 0x109   : > { %v428_v46 = vpop.f32.mrb[3].mxu0  ;;  %v468_v47 = vpop.f32.mrb[3].mxu1  ;;  %v530_v48 = vsel %vm498_vm3, %v716_v45, -inf  ;;  %v504_v53 = vsel %vm498_vm3, %v704_v44, -inf  ;;  %v674_v44 = vld [vmem:[%s1033_s2] ss:$0 sm:$0xff] (!%p673_p10) }
 0x10a   : > { %v502_v49 = vsel %vm498_vm3, %v428_v46, -inf  ;;  %v528_v50 = vsel %vm498_vm3, %v468_v47, -inf }
 0x10b   : > { %v503_v51 = vmax.f32 %v501_v42, %v502_v49  ;;  %v529_v52 = vmax.f32 %v527_v43, %v528_v50 }
 0x10c   : > { %v707_v54 = vpop.f32.mrb[4].mxu0  ;;  %v719_v55 = vpop.f32.mrb[4].mxu1 }
 0x10d   : > { %v505_v56 = vmax.f32 %v503_v51, %v504_v53  ;;  %v531_v57 = vmax.f32 %v529_v52, %v530_v48  ;;  %v513_v58 = vsel %vm498_vm3, %v707_v54, -inf  ;;  %v438_v59 = vpop.f32.mrb[5].mxu0  ;;  %v539_v60 = vsel %vm498_vm3, %v719_v55, -inf  ;;  %v478_v61 = vpop.f32.mrb[5].mxu1 }
 0x10e   : > { %v512_v62 = vsel %vm498_vm3, %v438_v59, -inf  ;;  %v538_v63 = vsel %vm498_vm3, %v478_v61, -inf }
 0x10f   : > { %v506_v0 = vrot.slane %v505_v56, 4  ;;  %v532_v1 = vrot.slane %v531_v57, 4  ;;  %v514_v2 = vmax.f32 %v512_v62, %v513_v58  ;;  %v540_v3 = vmax.f32 %v538_v63, %v539_v60 }
 0x110   : > { %v710_v4 = vpop.f32.mrb[6].mxu0  ;;  %v722_v5 = vpop.f32.mrb[6].mxu1 }
 0x111   : > { %v507_v6 = vmax.f32 %v505_v56, %v506_v0  ;;  %v448_v7 = vpop.f32.mrb[7].mxu0  ;;  %v488_v8 = vpop.f32.mrb[7].mxu1  ;;  %v533_v9 = vmax.f32 %v531_v57, %v532_v1  ;;  %v543_v10 = vsel %vm498_vm3, %v722_v5, -inf  ;;  %v517_v15 = vsel %vm498_vm3, %v710_v4, -inf }
 0x112   : > { %v515_v11 = vsel %vm498_vm3, %v448_v7, -inf  ;;  %v541_v12 = vsel %vm498_vm3, %v488_v8, -inf }
 0x113   : > { %v516_v13 = vmax.f32 %v514_v2, %v515_v11  ;;  %v542_v14 = vmax.f32 %v540_v3, %v541_v12  ;;  %v508_v16 = vrot.slane %v507_v6, 2  ;;  %v534_v19 = vrot.slane %v533_v9, 2 }
 0x115   : > { %v518_v17 = vmax.f32 %v516_v13, %v517_v15  ;;  %v544_v18 = vmax.f32 %v542_v14, %v543_v10  ;;  %v509_v22 = vmax.f32 %v507_v6, %v508_v16  ;;  %v535_v25 = vmax.f32 %v533_v9, %v534_v19 }
 0x117   : > { %v519_v20 = vrot.slane %v518_v17, 4  ;;  %v545_v21 = vrot.slane %v544_v18, 4  ;;  %v510_v28 = vrot.slane %v509_v22, 1  ;;  %v536_v31 = vrot.slane %v535_v25, 1 }
 0x119   : > { %v520_v23 = vmax.f32 %v518_v17, %v519_v20  ;;  %v546_v24 = vmax.f32 %v544_v18, %v545_v21  ;;  %v511_v34 = vmax.f32 %v509_v22, %v510_v28  ;;  %v537_v36 = vmax.f32 %v535_v25, %v536_v31 }
 0x11b   : > { %v521_v26 = vrot.slane %v520_v23, 2  ;;  %v547_v27 = vrot.slane %v546_v24, 2 }
 0x11d   : > { %v522_v29 = vmax.f32 %v520_v23, %v521_v26  ;;  %v548_v30 = vmax.f32 %v546_v24, %v547_v27 }
 0x11f   : > { %v523_v32 = vrot.slane %v522_v29, 1  ;;  %v549_v33 = vrot.slane %v548_v30, 1 }
 0x121   : > { %v524_v35 = vmax.f32 %v522_v29, %v523_v32  ;;  %v550_v39 = vmax.f32 %v548_v30, %v549_v33 }
 0x122   : > { %568 = sbr.rel (%p673_p10) target bundleno = 307 (0x133), region = 78 }
 0x123   : > { %v556_v37 = vsel %vm555_vm4, %v524_v35, %v511_v34 }
 0x124   : > { %v558_v40 = vsel %vm557_vm5, %v537_v36, %v556_v37 }
 0x125   : > { %v560_v41 = vsel %vm559_vm6, %v550_v39, %v558_v40 }
 0x126   : > { %v562_v42 = vmax.f32 %v497_v38, %v560_v41 }
 0x128   : > { %564 = vst.msk [vmem:[#allocation3] sm:$0xf] %vm563_vm7, %v562_v42 }
 0x12f   : > { %v569_v43 = vld [vmem:[#allocation3] sm:$0xf] }
 0x130   : > { %v577_v45 = vadd.f32 %v674_v44, %v569_v43 }
 0x132   : > { %578 = vst.msk [vmem:[#allocation3] sm:$0xf] %vm563_vm7, %v577_v45 }
 0x133 PF: > { %p990_p11 = scmp.eq.s32.totalorder %s647_s17, 1  ;;  %s844_s10 = smov [#allocation3]  }
 0x134   : > { %s588_s11 = sshll.u32 %s844_s10, 4  ;;  %s589_s11 = int_to_ptr.vmem [resolvable:$true] %s588_s11 }
 0x135   : > { %s773_s12 = scalar_lea.vmem %s589_s11, 64  ;;  %p780_p1 = scmp.lt.s32.totalorder %s589_s11, %s589_s11 }
 0x136   : > { %p774_p12 = scmp.ne.s32.totalorder %s589_s11, %s773_s12  ;;  %p781_p2 = scmp.lt.s32.totalorder %s773_s12, %s773_s12 }
 0x138   : > { %p775_p13 = pnand %p774_p12, %p990_p11  ;;  %p782_p3 = por %p781_p2, %p780_p1 }
 0x13a   : > { %p776_p0 = pneg %p775_p13 }
 0x13c   : > { %p783_p4 = pnand %p782_p3, %p776_p0 }
 0x13e   : > { %786 = shalt.err (!%p783_p4)
}
 0x13f   : > { %s787_s17 = scalar_lea.hbm %s1034_s3, 64 }
 0x140   : > { %p788_p5 = scmp.ne.s32.totalorder %s1034_s3, %s787_s17  ;;  %p793_p8 = scmp.lt.u32.totalorder %s787_s17, %s1034_s3 }
 0x142   : > { %p789_p6 = pnand %p788_p5, %p990_p11 }
 0x144   : > { %p790_p7 = pneg %p789_p6 }
 0x146   : > { %p795_p9 = pnand %p793_p8, %p790_p7 }
 0x148   : > { %798 = shalt.err (!%p795_p9)
}
 0x149   : > { %726 = dma.vmem_to_hbm [thread:$0]  (%p990_p11), %s589_s11, 64, %s1034_s3, [#allocation4]  }
 0x14a   : > { %820 = dma.done.wait (%p990_p11), [#allocation4], 64  }
 0x14b   : > { %822 = vsyncadd (%p990_p11), [#allocation4], 4294967232 }
 0x14c PF: > { %s14_s16 = sadd.s32 1, %s841_s16   ;;  %s1036_s12 = smov %s829_s13 }
 0x14d   : > { %p11_p10 = scmp.ge.s32.totalorder %s14_s16, 4   ;;  %s1037_s13 = smov %s901_s21 }
 0x14e   : > { %s1038_s14 = smov %s837_s15  ;;  %s1039_s15 = smov %s1041_s18 }
 0x14f   :  { %13 = sbr.rel (!%p11_p10) target bundleno = 3 (0x3), region = 111 }
 0x156   :  { %601 = vsyncpa [#allocation4], 1 }
 0x157   :  { %603 = vsyncpa [#allocation4 + $0x1], 1 }

</bundles_post_ra>
